<compile_context>
chip_gen: v6e
topology: v6e:2x2x1
jax: 0.10.0
libtpu: 0.0.40
codegen_flags: <defaults>
</compile_context>

<pallas_src>
import jax
import jax.numpy as jnp
from jax import lax
from jax.experimental import pallas as pl
from jax.experimental.pallas import tpu as pltpu


def _make_clip_loss_kernel(n, tm, n_tiles):
    """Builds the kernel with static tile geometry baked in."""

    def kernel(logits_ref, out_ref, col_max_ref, col_sum_ref, diag_ref, cap_ref):
        i = pl.program_id(0)

        # ---- init persistent accumulators on the first row tile ----
        @pl.when(i == 0)
        def _init():
            col_max_ref[...] = jnp.full_like(col_max_ref, -jnp.inf)
            col_sum_ref[...] = jnp.zeros_like(col_sum_ref)
            diag_ref[...] = jnp.zeros_like(diag_ref)
            cap_ref[...] = jnp.zeros_like(cap_ref)

        # Cast in-kernel (input stays in native dtype in HBM).
        x = logits_ref[...].astype(jnp.float32)                     # (tm, N)

        # ---- caption direction: per-row logsumexp (lane-direction reduce) ----
        row_max = jnp.max(x, axis=1, keepdims=True)                 # (tm, 1)
        row_lse = jnp.log(jnp.sum(jnp.exp(x - row_max), axis=1,
                                  keepdims=True)) + row_max         # (tm, 1)

        # ---- diagonal: only the (tm, tm) diagonal sub-block of this row tile ----
        if n_tiles == 1:
            d = x                                                   # whole matrix
        else:
            col_start = pl.multiple_of(i * tm, tm)                  # 128-aligned
            d = logits_ref[:, pl.ds(col_start, tm)].astype(jnp.float32)
        ri = lax.broadcasted_iota(jnp.int32, (tm, tm), 0)
        ci = lax.broadcasted_iota(jnp.int32, (tm, tm), 1)
        masked = jnp.where(ri == ci, d, 0.0)
        diag_col = jnp.sum(masked, axis=1, keepdims=True)           # (tm, 1): d[r, r]
        diag_row = jnp.sum(masked, axis=0, keepdims=True)           # (1, tm): d[c, c]

        # caption partial: per-row differences (numerically safer than
        # sum(lse) - sum(diag) over the whole matrix)
        cap_ref[...] += jnp.sum(row_lse - diag_col, keepdims=True)  # (1, 1)

        # stash diagonal values at their column positions for the image direction
        if n_tiles == 1:
            diag_ref[...] = diag_row
        else:
            diag_ref[:, pl.ds(col_start, tm)] = diag_row

        # ---- image direction: online per-column logsumexp across row tiles ----
        tile_col_max = jnp.max(x, axis=0, keepdims=True)            # (1, N)
        m_old = col_max_ref[...]
        m_new = jnp.maximum(m_old, tile_col_max)
        # exp(-inf - finite) == 0, so the first tile is handled without NaNs.
        col_sum_ref[...] = (col_sum_ref[...] * jnp.exp(m_old - m_new)
                            + jnp.sum(jnp.exp(x - m_new), axis=0, keepdims=True))
        col_max_ref[...] = m_new

        # ---- finalize scalar loss on the last row tile ----
        @pl.when(i == n_tiles - 1)
        def _finalize():
            col_lse = jnp.log(col_sum_ref[...]) + col_max_ref[...]          # (1, N)
            image_sum = jnp.sum(col_lse - diag_ref[...], keepdims=True)     # (1, 1)
            total = (cap_ref[...] + image_sum) / (2.0 * n)                  # (1, 1)
            out_ref[0, 0] = total[0, 0]

    return kernel


def _pick_row_tile(n, itemsize, max_tile_bytes=8 * 1024 * 1024):
    """Largest 128-aligned row tile that divides N and fits the VMEM budget.

    The budget is per buffer; BlockSpec double-buffers the input, so total input
    VMEM is ~2x this, which stays under the 32 MiB scoped limit we request.
    """
    for tm in (1024, 512, 256, 128):
        if n % tm == 0 and tm * n * itemsize <= max_tile_bytes:
            return tm
    # Fallback: single full-matrix block (block_shape == array shape always
    # satisfies the (8, 128) tiling rule, for any N).
    return n


def contrastive_loss_pallas(logits_per_unit, *, tm=None):
    """logits_per_unit: (N, N) similarity matrix (any float dtype). Returns f32 scalar."""
    n, n2 = logits_per_unit.shape
    assert n == n2, "CLIP loss expects a square logits matrix"
    itemsize = jnp.dtype(logits_per_unit.dtype).itemsize

    if tm is None:
        tm = _pick_row_tile(n, itemsize)
    assert n % tm == 0, "row tile must divide N"
    n_tiles = n // tm

    kernel = _make_clip_loss_kernel(n, tm, n_tiles)

    out = pl.pallas_call(
        kernel,
        out_shape=jax.ShapeDtypeStruct((1, 1), jnp.float32),
        grid_spec=pltpu.PrefetchScalarGridSpec(
            num_scalar_prefetch=0,
            grid=(n_tiles,),
            in_specs=[pl.BlockSpec((tm, n), lambda i: (i, 0))],
            out_specs=pl.BlockSpec(memory_space=pltpu.SMEM),
            scratch_shapes=[
                pltpu.VMEM((1, n), jnp.float32),   # running per-column max
                pltpu.VMEM((1, n), jnp.float32),   # running per-column sum-exp
                pltpu.VMEM((1, n), jnp.float32),   # diagonal values per column
                pltpu.VMEM((1, 1), jnp.float32),   # caption-direction partial sum
            ],
        ),
        compiler_params=pltpu.CompilerParams(
            dimension_semantics=("arbitrary",),     # sequential reduction over row tiles
            vmem_limit_bytes=32 * 1024 * 1024,      # safe on v5e/v6e/v7x
        ),
        cost_estimate=pl.CostEstimate(
            flops=8 * n * n,
            transcendentals=2 * n * n,
            bytes_accessed=n * n * itemsize + 4,
        ),
    )(logits_per_unit)
    return out[0, 0]


def _reference_loss(logits):
    # Pure-JAX reference for sanity checking.
    logits = logits.astype(jnp.float32)

    def ce(lg):
        lse = jax.scipy.special.logsumexp(lg, axis=1)
        diag = jnp.diagonal(lg)
        return jnp.mean(lse - diag)

    return (ce(logits) + ce(logits.T)) / 2.0


if __name__ == "__main__":
    key = jax.random.PRNGKey(0)
    k1, k2 = jax.random.split(key)

    # Multi-tile path: N=256, forced 128-row tiles -> 2 pipelined grid steps.
    n1 = 256
    logits1 = jax.random.normal(k1, (n1, n1), dtype=jnp.float32) * 3.0
    loss1 = jax.block_until_ready(contrastive_loss_pallas(logits1, tm=128))
    ref1 = _reference_loss(logits1)
    assert jnp.allclose(loss1, ref1, atol=1e-4, rtol=1e-5), (loss1, ref1)

    # Single full-block fallback path (N not a multiple of 128).
    n2 = 96
    logits2 = jax.random.normal(k2, (n2, n2), dtype=jnp.float32) * 3.0
    loss2 = jax.block_until_ready(contrastive_loss_pallas(logits2))
    ref2 = _reference_loss(logits2)
    assert jnp.allclose(loss2, ref2, atol=1e-4, rtol=1e-5), (loss2, ref2)

    print("KERNEL_OK")
</pallas_src>

<mosaic_0001>
module attributes {stable_mosaic.version = 11 : i64} {
  func.func @kernel(%arg0: i32, %arg1: memref<128x256xf32, #tpu.memory_space<vmem>>, %arg2: memref<1x1xf32, #tpu.memory_space<smem>>, %arg3: memref<1x256xf32, #tpu.memory_space<vmem>>, %arg4: memref<1x256xf32, #tpu.memory_space<vmem>>, %arg5: memref<1x256xf32, #tpu.memory_space<vmem>>, %arg6: memref<1x1xf32, #tpu.memory_space<vmem>>) attributes {dimension_semantics = [#tpu.dimension_semantics<arbitrary>], iteration_bounds = array<i64: 2>, scalar_prefetch = 0 : i64, scratch_operands = 4 : i64, tpu.core_type = #tpu.core_type<tc>, window_params = [{transform_indices = @transform_0, window_bounds = array<i64: 128, 256>}, {transform_indices = @transform_1, window_bounds = array<i64: 1, 1>}]} {
    %c0_i32 = arith.constant 0 : i32
    %0 = arith.cmpi eq, %arg0, %c0_i32 : i32
    %1 = arith.extui %0 : i1 to i32
    %c0_i32_0 = arith.constant 0 : i32
    %2 = arith.cmpi ne, %1, %c0_i32_0 : i32
    scf.if %2 {
      %cst_24 = arith.constant 0xFF800000 : f32
      %56 = vector.broadcast %cst_24 : f32 to vector<1x256xf32>
      %c0_25 = arith.constant 0 : index
      %c0_26 = arith.constant 0 : index
      %57 = vector.load %arg3[%c0_25, %c0_26] : memref<1x256xf32, #tpu.memory_space<vmem>>, vector<1x256xf32>
      tpu.vector_store %arg3[%c0_25, %c0_26], %56 {strides = array<i32>} : memref<1x256xf32, #tpu.memory_space<vmem>>, vector<1x256xf32>,
      %cst_27 = arith.constant 0.000000e+00 : f32
      %58 = vector.broadcast %cst_27 : f32 to vector<1x256xf32>
      %c0_28 = arith.constant 0 : index
      %c0_29 = arith.constant 0 : index
      %59 = vector.load %arg4[%c0_28, %c0_29] : memref<1x256xf32, #tpu.memory_space<vmem>>, vector<1x256xf32>
      tpu.vector_store %arg4[%c0_28, %c0_29], %58 {strides = array<i32>} : memref<1x256xf32, #tpu.memory_space<vmem>>, vector<1x256xf32>,
      %cst_30 = arith.constant 0.000000e+00 : f32
      %60 = vector.broadcast %cst_30 : f32 to vector<1x256xf32>
      %c0_31 = arith.constant 0 : index
      %c0_32 = arith.constant 0 : index
      %61 = vector.load %arg5[%c0_31, %c0_32] : memref<1x256xf32, #tpu.memory_space<vmem>>, vector<1x256xf32>
      tpu.vector_store %arg5[%c0_31, %c0_32], %60 {strides = array<i32>} : memref<1x256xf32, #tpu.memory_space<vmem>>, vector<1x256xf32>,
      %cst_33 = arith.constant 0.000000e+00 : f32
      %62 = vector.broadcast %cst_33 : f32 to vector<1x1xf32>
      %c0_34 = arith.constant 0 : index
      %c0_35 = arith.constant 0 : index
      %63 = vector.load %arg6[%c0_34, %c0_35] : memref<1x1xf32, #tpu.memory_space<vmem>>, vector<1x1xf32>
      tpu.vector_store %arg6[%c0_34, %c0_35], %62 {strides = array<i32>} : memref<1x1xf32, #tpu.memory_space<vmem>>, vector<1x1xf32>,
    } else {
    }
    %c0 = arith.constant 0 : index
    %c0_1 = arith.constant 0 : index
    %3 = vector.load %arg1[%c0, %c0_1] : memref<128x256xf32, #tpu.memory_space<vmem>>, vector<128x256xf32>
    %cst = arith.constant dense<0xFF800000> : vector<128xf32>
    %4 = vector.multi_reduction <maximumf>, %3, %cst [1] : vector<128x256xf32> to vector<128xf32>
    %5 = vector.shape_cast %4 : vector<128xf32> to vector<128x1xf32>
    %6 = vector.broadcast %5 : vector<128x1xf32> to vector<128x256xf32>
    %7 = arith.subf %3, %6 : vector<128x256xf32>
    %8 = math.exp %7 : vector<128x256xf32>
    %cst_2 = arith.constant dense<0.000000e+00> : vector<128xf32>
    %9 = vector.multi_reduction <add>, %8, %cst_2 [1] : vector<128x256xf32> to vector<128xf32>
    %10 = vector.shape_cast %9 : vector<128xf32> to vector<128x1xf32>
    %11 = math.log %10 : vector<128x1xf32>
    %12 = arith.addf %11, %5 : vector<128x1xf32>
    %c128_i32 = arith.constant 128 : i32
    %13 = arith.muli %arg0, %c128_i32 : i32
    %14 = tpu.assume_multiple %13, 128 : i32
    %c0_3 = arith.constant 0 : index
    %15 = arith.index_cast %14 : i32 to index
    %16 = vector.load %arg1[%c0_3, %15] : memref<128x256xf32, #tpu.memory_space<vmem>>, vector<128x128xf32>
    %17 = tpu.iota {dimensions = array<i32: 0>} : vector<128x128xi32>
    %18 = tpu.iota {dimensions = array<i32: 1>} : vector<128x128xi32>
    %19 = arith.cmpi eq, %17, %18 : vector<128x128xi32>
    %cst_4 = arith.constant 0.000000e+00 : f32
    %20 = vector.broadcast %cst_4 : f32 to vector<128x128xf32>
    %21 = arith.select %19, %16, %20 : vector<128x128xi1>, vector<128x128xf32>
    %cst_5 = arith.constant dense<0.000000e+00> : vector<128xf32>
    %22 = vector.multi_reduction <add>, %21, %cst_5 [1] : vector<128x128xf32> to vector<128xf32>
    %23 = vector.shape_cast %22 : vector<128xf32> to vector<128x1xf32>
    %cst_6 = arith.constant dense<0.000000e+00> : vector<128xf32>
    %24 = vector.multi_reduction <add>, %21, %cst_6 [0] : vector<128x128xf32> to vector<128xf32>
    %25 = vector.shape_cast %24 : vector<128xf32> to vector<1x128xf32>
    %c0_7 = arith.constant 0 : index
    %c0_8 = arith.constant 0 : index
    %26 = vector.load %arg6[%c0_7, %c0_8] : memref<1x1xf32, #tpu.memory_space<vmem>>, vector<1x1xf32>
    %27 = arith.subf %12, %23 : vector<128x1xf32>
    %28 = vector.shape_cast %27 : vector<128x1xf32> to vector<1x128x1xf32>
    %cst_9 = arith.constant dense<0.000000e+00> : vector<1xf32>
    %29 = vector.multi_reduction <add>, %28, %cst_9 [1, 2] : vector<1x128x1xf32> to vector<1xf32>
    %30 = vector.shape_cast %29 : vector<1xf32> to vector<1x1x1xf32>
    %31 = vector.extract %30[0, 0, 0] : f32 from vector<1x1x1xf32>
    %32 = vector.broadcast %31 : f32 to vector<1x1xf32>
    %33 = arith.addf %26, %32 : vector<1x1xf32>
    %c0_10 = arith.constant 0 : index
    %c0_11 = arith.constant 0 : index
    %34 = vector.load %arg6[%c0_10, %c0_11] : memref<1x1xf32, #tpu.memory_space<vmem>>, vector<1x1xf32>
    tpu.vector_store %arg6[%c0_10, %c0_11], %33 {strides = array<i32>} : memref<1x1xf32, #tpu.memory_space<vmem>>, vector<1x1xf32>,
    %c0_12 = arith.constant 0 : index
    %35 = arith.index_cast %14 : i32 to index
    %36 = vector.load %arg5[%c0_12, %35] : memref<1x256xf32, #tpu.memory_space<vmem>>, vector<1x128xf32>
    tpu.vector_store %arg5[%c0_12, %35], %25 {strides = array<i32>} : memref<1x256xf32, #tpu.memory_space<vmem>>, vector<1x128xf32>,
    %cst_13 = arith.constant dense<0xFF800000> : vector<256xf32>
    %37 = vector.multi_reduction <maximumf>, %3, %cst_13 [0] : vector<128x256xf32> to vector<256xf32>
    %38 = vector.shape_cast %37 : vector<256xf32> to vector<1x256xf32>
    %c0_14 = arith.constant 0 : index
    %c0_15 = arith.constant 0 : index
    %39 = vector.load %arg3[%c0_14, %c0_15] : memref<1x256xf32, #tpu.memory_space<vmem>>, vector<1x256xf32>
    %40 = arith.maximumf %39, %38 : vector<1x256xf32>
    %c0_16 = arith.constant 0 : index
    %c0_17 = arith.constant 0 : index
    %41 = vector.load %arg4[%c0_16, %c0_17] : memref<1x256xf32, #tpu.memory_space<vmem>>, vector<1x256xf32>
    %42 = arith.subf %39, %40 : vector<1x256xf32>
    %43 = math.exp %42 : vector<1x256xf32>
    %44 = arith.mulf %41, %43 : vector<1x256xf32>
    %45 = vector.broadcast %40 : vector<1x256xf32> to vector<128x256xf32>
    %46 = arith.subf %3, %45 : vector<128x256xf32>
    %47 = math.exp %46 : vector<128x256xf32>
    %cst_18 = arith.constant dense<0.000000e+00> : vector<256xf32>
    %48 = vector.multi_reduction <add>, %47, %cst_18 [0] : vector<128x256xf32> to vector<256xf32>
    %49 = vector.shape_cast %48 : vector<256xf32> to vector<1x256xf32>
    %50 = arith.addf %44, %49 : vector<1x256xf32>
    %c0_19 = arith.constant 0 : index
    %c0_20 = arith.constant 0 : index
    %51 = vector.load %arg4[%c0_19, %c0_20] : memref<1x256xf32, #tpu.memory_space<vmem>>, vector<1x256xf32>
    tpu.vector_store %arg4[%c0_19, %c0_20], %50 {strides = array<i32>} : memref<1x256xf32, #tpu.memory_space<vmem>>, vector<1x256xf32>,
    %c0_21 = arith.constant 0 : index
    %c0_22 = arith.constant 0 : index
    %52 = vector.load %arg3[%c0_21, %c0_22] : memref<1x256xf32, #tpu.memory_space<vmem>>, vector<1x256xf32>
    tpu.vector_store %arg3[%c0_21, %c0_22], %40 {strides = array<i32>} : memref<1x256xf32, #tpu.memory_space<vmem>>, vector<1x256xf32>,
    %c1_i32 = arith.constant 1 : i32
    %53 = arith.cmpi eq, %arg0, %c1_i32 : i32
    %54 = arith.extui %53 : i1 to i32
    %c0_i32_23 = arith.constant 0 : i32
    %55 = arith.cmpi ne, %54, %c0_i32_23 : i32
    scf.if %55 {
      %c0_24 = arith.constant 0 : index
      %c0_25 = arith.constant 0 : index
      %56 = vector.load %arg4[%c0_24, %c0_25] : memref<1x256xf32, #tpu.memory_space<vmem>>, vector<1x256xf32>
      %57 = math.log %56 : vector<1x256xf32>
      %c0_26 = arith.constant 0 : index
      %c0_27 = arith.constant 0 : index
      %58 = vector.load %arg3[%c0_26, %c0_27] : memref<1x256xf32, #tpu.memory_space<vmem>>, vector<1x256xf32>
      %59 = arith.addf %57, %58 : vector<1x256xf32>
      %c0_28 = arith.constant 0 : index
      %c0_29 = arith.constant 0 : index
      %60 = vector.load %arg5[%c0_28, %c0_29] : memref<1x256xf32, #tpu.memory_space<vmem>>, vector<1x256xf32>
      %61 = arith.subf %59, %60 : vector<1x256xf32>
      %62 = vector.shape_cast %61 : vector<1x256xf32> to vector<1x1x256xf32>
      %cst_30 = arith.constant dense<0.000000e+00> : vector<1xf32>
      %63 = vector.multi_reduction <add>, %62, %cst_30 [1, 2] : vector<1x1x256xf32> to vector<1xf32>
      %64 = vector.shape_cast %63 : vector<1xf32> to vector<1x1x1xf32>
      %65 = vector.extract %64[0, 0, 0] : f32 from vector<1x1x1xf32>
      %66 = vector.broadcast %65 : f32 to vector<1x1xf32>
      %c0_31 = arith.constant 0 : index
      %c0_32 = arith.constant 0 : index
      %67 = vector.load %arg6[%c0_31, %c0_32] : memref<1x1xf32, #tpu.memory_space<vmem>>, vector<1x1xf32>
      %68 = arith.addf %67, %66 : vector<1x1xf32>
      %cst_33 = arith.constant 5.120000e+02 : f32
      %69 = vector.broadcast %cst_33 : f32 to vector<1x1xf32>
      %70 = arith.divf %68, %69 : vector<1x1xf32>
      %71 = vector.extract %70[0, 0] : f32 from vector<1x1xf32>
      %c0_34 = arith.constant 0 : index
      %c0_35 = arith.constant 0 : index
      %72 = memref.load %arg2[%c0_34, %c0_35] : memref<1x1xf32, #tpu.memory_space<smem>>
      memref.store %71, %arg2[%c0_34, %c0_35] : memref<1x1xf32, #tpu.memory_space<smem>>
    } else {
    }
    return
  }
  func.func @transform_0(%arg0: i32) -> (i32, i32) {
    %c0_i32 = arith.constant 0 : i32
    %c0_i32_0 = arith.constant 0 : i32
    return %arg0, %c0_i32 : i32, i32
  }
  func.func @transform_1(%arg0: i32) -> (i32, i32) {
    %c0_i32 = arith.constant 0 : i32
    %c0_i32_0 = arith.constant 0 : i32
    %c0_i32_1 = arith.constant 0 : i32
    return %c0_i32, %c0_i32_0 : i32, i32
  }
}

</mosaic_0001>

<bundles_post_ra>
// kernel: tpu_custom_call.1
= control target key start
LH: loop header
LB: loop body
LE: loop exit
PB: predicated region body
PF: predicated region fallthrough
CT: control target
= control target key end

     0   :  { %6 = vsyncpa [#allocation7], 0  ;;  %s1904_s0 = inlined_call_operand.hbm [shape: f32[256,256], index: 0, kind: input, shape index: {}]   ;;  %s1905_s1 = inlined_call_operand.hbm [shape: f32[1,1], index: 1, kind: output, shape index: {}]  }
   0x1   :  { %8 = vsyncpa [#allocation7 + $0x1], 0 }
   0x2   :  { %9 = vsyncpa [#allocation8], 0  ;;  %s1279_s6 = smov 0   ;;  %s1281_s7 = smov 0  }
   0x3   :  { %s1283_s8 = smov 0   ;;  %s1285_s9 = smov 0  }
   0x4 LB: > { %s1298_s10 = sadd.s32 4294967295, %s1260_s9   ;;  %s1301_s11 = sadd.s32 1, %s1260_s9   ;;  %s1260_s9 = sphi %s1285_s9, %s1957_s9   ;;  %s1256_s8 = sphi %s1283_s8, %s1956_s8   ;;  %s1252_s7 = sphi %s1281_s7, %s1955_s7   ;;  %s1248_s6 = sphi %s1279_s6, %s1954_s6  }
   0x5   : > { %s19_s12 = ssub.s32 %s1260_s9, %s1301_s11  ;;  %s22_s13 = sadd.s32 1, %s1256_s8 }
   0x6   : > { %p20_p0 = scmp.eq.s32.totalorder %s19_s12, 0  ;;  %p29_p1 = scmp.ne.s32.totalorder %s1256_s8, %s1252_s7 }
   0x7   : > { %p30_p2 = scmp.eq.s32.totalorder %s1260_s9, 0  ;;  %p35_p3 = scmp.ne.s32.totalorder %s1252_s7, %s1248_s6 }
   0x8   : > { %s1311_s14 = scalar_select %p20_p0, %s1256_s8, %s22_s13  }
   0x9   : > { %p31_p4 = por %p30_p2, %p29_p1  ;;  %p36_p5 = scmp.eq.s32.totalorder %s1298_s10, 0 }
   0xa   : > { %p979_p6 = scmp.lt.s32.totalorder %s1260_s9, 2  ;;  %s80_s16 = sand.u32 1, %s1256_s8  }
   0xb   : > { %p1315_p7 = por %p36_p5, %p35_p3  ;;  %s947_s17 = sshll.u32 %s80_s16, 8 }
   0xc   : > { %s962_s18 = sshll.u32 %s1260_s9, 12  ;;  %s84_s22 = scalar_lea.vmem [#allocation6], %s947_s17 }
   0xd   : > { %s1921_s15 = scalar_select %p1315_p7, 1, 0 }
   0xe   : > { %s1324_s21 = scalar_lea.hbm %s1904_s0, %s962_s18  ;;  %s92_s23 = sshll.u32 %s84_s22, 4  ;;  %s1326_s23 = int_to_ptr.vmem [resolvable:$true] %s92_s23 }
   0xf   : > { %p1328_p8 = pnand %p979_p6, %p31_p4  ;;  %s1333_s25 = scalar_lea.sflag [#allocation7], %s80_s16 }
  0x10   : > { %s1184_s26 = scalar_lea.hbm %s1324_s21, 4096  ;;  %s1189_s29 = scalar_lea.hbm %s1904_s0, 8192 }
  0x11   : > { %p1185_p10 = scmp.ne.s32.totalorder %s1324_s21, %s1184_s26  ;;  %p1186_p11 = pneg %p1328_p8 }
  0x12   : > { %p1190_p0 = scmp.lt.s32.totalorder %s1324_s21, %s1904_s0  ;;  %p1191_p1 = scmp.lt.s32.totalorder %s1189_s29, %s1184_s26 }
  0x13   : > { %p1187_p12 = pnand %p1186_p11, %p1185_p10 }
  0x14   : > { %p1192_p2 = por %p1191_p1, %p1190_p0 }
  0x15   : > { %p1188_p13 = pneg %p1187_p12 }
  0x17   : > { %p1193_p3 = pnand %p1192_p2, %p1188_p13 }
  0x19   : > { %1196 = shalt.err (!%p1193_p3)
}
  0x1a   : > { %s1197_s3 = scalar_lea.vmem %s1326_s23, 4096  ;;  %s1262_s4 = smov [#allocation6]  }
  0x1b   : > { %p1198_p4 = scmp.ne.s32.totalorder %s1326_s23, %s1197_s3  ;;  %s1202_s5 = sshll.u32 %s1262_s4, 4  ;;  %s1203_s5 = int_to_ptr.vmem [resolvable:$false] %s1202_s5 }
  0x1c   : > { %s1204_s6 = scalar_lea.vmem %s1203_s5, 8192  ;;  %p1205_p10 = scmp.lt.s32.totalorder %s1326_s23, %s1203_s5 }
  0x1d   : > { %p1200_p5 = pnand %p1198_p4, %p1186_p11  ;;  %p1206_p12 = scmp.lt.s32.totalorder %s1204_s6, %s1197_s3 }
  0x1f   : > { %p1201_p6 = pneg %p1200_p5  ;;  %p1207_p9 = por %p1206_p12, %p1205_p10 }
  0x21   : > { %p1208_p7 = pnand %p1207_p9, %p1201_p6 }
  0x23   : > { %1211 = shalt.err (!%p1208_p7)
}
  0x24   : > { %s1263_s12 = smov 256   ;;  %s1264_s13 = smov 16  }
  0x25   : > { %978 = dma.hbm_to_vmem [thread:$0]  (!%p1328_p8), %s1324_s21, 4096, %s1326_s23, %s1333_s25, %s1263_s12, %s1263_s12, %s1264_s13  }
  0x26   : > { %p100_p11 = scmp.lt.s32.totalorder %s1260_s9, 3  ;;  %p1923_p13 = scmp.ge.s32.totalorder %s1260_s9, 1 }
  0x28   : > { %p101_p0 = pnand %p1923_p13, %p100_p11 }
  0x2a   : > { %104 = sbr.rel (%p101_p0) target bundleno = 920 (0x398), region = 24 }
  0x2f   : > { %s106_s16 = sand.u32 1, %s1252_s7   ;;  %p1924_p7 = scmp.ne.s32.totalorder %s1921_s15, 0 }
  0x30   : > { %s952_s17 = sshll.u32 %s106_s16, 8  ;;  %s107_s18 = scalar_lea.sflag [#allocation7], %s106_s16 }
  0x31   : > { %s1358_s19 = scalar_lea.vmem [#allocation6], %s952_s17 }
  0x32   : > { %1239 = dma.done.wait (%p1924_p7), %s107_s18, 4096  }
  0x33   : > { %1241 = vsyncadd (%p1924_p7), %s107_s18, 4294963200  ;;  %p953_p9 = scmp.ne.s32.totalorder %s1298_s10, 0 }
  0x35   : > { %128 = sbr.rel (%p953_p9) target bundleno = 63 (0x3f), region = 32 }
  0x3a   : > { %v129_v0 = vlaneseq  ;;  %vm136_vm0 = vcmask 0   ;;  %v1265_v1 = vmov 0.0   ;;  %v1266_v2 = vmov -inf  }
  0x3b   : > { %137 = vst.msk [vmem:[#allocation5] sm:$0x1] %vm136_vm0, %v1265_v1 }
  0x3c   : > { %vm131_vm1 = vcmp.lt.s32.totalorder %v129_v0, 256 }
  0x3d   : > { %133 = vst.msk [vmem:[#allocation2] sm:$0x3] %vm131_vm1, %v1266_v2  ;;  %134 = vst.msk [vmem:[#allocation3] sm:$0x3] %vm131_vm1, %v1265_v1 }
  0x3e   : > { %135 = vst.msk [vmem:[#allocation4] sm:$0x3] %vm131_vm1, %v1265_v1 }
  0x3f PF: > { %v1366_v3 = vld [vmem:[%s1358_s19] sm:$0xff]  ;;  %v1369_v4 = vld [vmem:[%s1358_s19 + $0x8] sm:$0xff]  ;;  %v1382_v9 = vld [vmem:[%s1358_s19 + $0x10] sm:$0xff]  ;;  %s954_s9 = sshll.u32 %s1298_s10, 7  ;;  %p956_p8 = scmp.ne.s32.totalorder %s1298_s10, 1 }
  0x40   : > { %v1372_v5 = vld [vmem:[%s1358_s19 + $0x20] sm:$0xff]  ;;  %v170_v6 = vmax.f32 %v1366_v3, %v1369_v4  ;;  %v1377_v7 = vld [vmem:[%s1358_s19 + $0x28] sm:$0xff]  ;;  %v1385_v10 = vld [vmem:[%s1358_s19 + $0x18] sm:$0xff]  ;;  %s1518_s15 = sshra.s32 %s954_s9, 7 }
  0x41   : > { %v603_v8 = vmax.f32 %v1366_v3, %v1372_v5  ;;  %v176_v11 = vmax.f32 %v1372_v5, %v1377_v7  ;;  %v624_v12 = vmax.f32 %v1369_v4, %v1377_v7  ;;  %v1392_v13 = vld [vmem:[%s1358_s19 + $0x30] sm:$0xff]  ;;  %v1395_v14 = vld [vmem:[%s1358_s19 + $0x38] sm:$0xff]  ;;  %v1398_v15 = vld [vmem:[%s1358_s19 + $0x40] sm:$0xff]  ;;  %v173_v16 = vmax.f32 %v1382_v9, %v1385_v10  ;;  %s955_s20 = sshll.u32 %s1518_s15, 3  ;;  %s597_s22 = scalar_lea.vmem [#allocation4], %s1518_s15 }
  0x42   : > { %171 = vmax.xlane.f32.xlu0 %v170_v6  ;;  %v604_v17 = vmax.f32 %v1382_v9, %v1392_v13  ;;  %v625_v18 = vmax.f32 %v1385_v10, %v1395_v14  ;;  %v1407_v19 = vld [vmem:[%s1358_s19 + $0x48] sm:$0xff]  ;;  %v179_v21 = vmax.f32 %v1392_v13, %v1395_v14  ;;  %v1414_v23 = vld [vmem:[%s1358_s19 + $0x50] sm:$0xff]  ;;  %v1417_v24 = vld [vmem:[%s1358_s19 + $0x58] sm:$0xff]  ;;  %s1533_s21 = scalar_lea.vmem %s1358_s19, %s955_s20 [#allocation6] }
  0x43   : > { %v605_v20 = vmax.f32 %v603_v8, %v1398_v15  ;;  %177 = vmax.xlane.f32.xlu1 %v176_v11  ;;  %v626_v22 = vmax.f32 %v624_v12, %v1407_v19  ;;  %v1420_v25 = vld [vmem:[%s1358_s19 + $0x60] sm:$0xff]  ;;  %v1425_v28 = vld [vmem:[%s1358_s19 + $0x68] sm:$0xff]  ;;  %v1430_v31 = vld [vmem:[%s1358_s19 + $0x70] sm:$0xff]  ;;  %v182_v34 = vmax.f32 %v1398_v15, %v1407_v19  ;;  %v185_v39 = vmax.f32 %v1414_v23, %v1417_v24 }
  0x44   : > { %v606_v26 = vmax.f32 %v604_v17, %v1414_v23  ;;  %v627_v27 = vmax.f32 %v625_v18, %v1417_v24  ;;  %v1433_v32 = vld [vmem:[%s1358_s19 + $0x78] sm:$0xff]  ;;  %v1436_v33 = vld [vmem:[%s1358_s19 + $0x80] sm:$0xff]  ;;  %v1443_v37 = vld [vmem:[%s1358_s19 + $0x88] sm:$0xff]  ;;  %v188_v52 = vmax.f32 %v1420_v25, %v1425_v28  ;;  %v1909_v18 = vlaneseq }
  0x45   : > { %v607_v29 = vmax.f32 %v605_v20, %v1420_v25  ;;  %v628_v30 = vmax.f32 %v626_v22, %v1425_v28  ;;  %v1450_v41 = vld [vmem:[%s1358_s19 + $0x90] sm:$0xff]  ;;  %v1453_v42 = vld [vmem:[%s1358_s19 + $0x98] sm:$0xff]  ;;  %v1456_v43 = vld [vmem:[%s1358_s19 + $0xa0] sm:$0xff]  ;;  %v191_v57 = vmax.f32 %v1430_v31, %v1433_v32  ;;  %v194_v11 = vmax.f32 %v1436_v33, %v1443_v37 }
  0x46   : > { %174 = vmax.xlane.f32.xlu0 %v173_v16  ;;  %v608_v35 = vmax.f32 %v606_v26, %v1430_v31  ;;  %v629_v36 = vmax.f32 %v627_v27, %v1433_v32  ;;  %1925 = vst [vmem:[#allocation12_spill] sm:$0xff] %v1456_v43  ;;  %v1461_v46 = vld [vmem:[%s1358_s19 + $0xa8] sm:$0xff]  ;;  %v1466_v49 = vld [vmem:[%s1358_s19 + $0xb0] sm:$0xff]  ;;  %v1469_v50 = vld [vmem:[%s1358_s19 + $0xb8] sm:$0xff]  ;;  %v197_v17 = vmax.f32 %v1450_v41, %v1453_v42  ;;  %vm1556_vm5 = vcmp.lt.s32.totalorder %v1909_v18, 256 }
  0x47   : > { %v609_v38 = vmax.f32 %v607_v29, %v1436_v33  ;;  %180 = vmax.xlane.f32.xlu1 %v179_v21  ;;  %v630_v40 = vmax.f32 %v628_v30, %v1443_v37  ;;  %1926 = vst [vmem:[#allocation13_spill] sm:$0xff] %v1461_v46  ;;  %1927 = vst [vmem:[#allocation14_spill] sm:$0xff] %v1466_v49  ;;  %v1472_v51 = vld [vmem:[%s1358_s19 + $0xc0] sm:$0xff]  ;;  %v1479_v55 = vld [vmem:[%s1358_s19 + $0xc8] sm:$0xff]  ;;  %v200_v22 = vmax.f32 %v1456_v43, %v1461_v46  ;;  %v1267_v30 = vmov 1966171168  }
  0x48   : > { %v610_v44 = vmax.f32 %v608_v35, %v1450_v41  ;;  %v631_v45 = vmax.f32 %v629_v36, %v1453_v42  ;;  %1928 = vst [vmem:[#allocation15_spill] sm:$0xff] %v1469_v50  ;;  %1929 = vst [vmem:[#allocation16_spill] sm:$0xff] %v1472_v51  ;;  %v1486_v59 = vld [vmem:[%s1358_s19 + $0xd0] sm:$0xff]  ;;  %v1489_v60 = vld [vmem:[%s1358_s19 + $0xd8] sm:$0xff]  ;;  %v203_v29 = vmax.f32 %v1466_v49, %v1469_v50  ;;  %v1521_v35 = vshrl.u32 %v1909_v18, 7 }
  0x49   : > { %v611_v47 = vmax.f32 %v609_v38, %v1456_v43  ;;  %v632_v48 = vmax.f32 %v630_v40, %v1461_v46  ;;  %1930 = vst [vmem:[#allocation17_spill] sm:$0xff] %v1479_v55  ;;  %1931 = vst [vmem:[#allocation18_spill] sm:$0xff] %v1486_v59  ;;  %v1492_v61 = vld [vmem:[%s1358_s19 + $0xe0] sm:$0xff]  ;;  %v1497_v0 = vld [vmem:[%s1358_s19 + $0xe8] sm:$0xff] }
  0x4a   : > { %183 = vmax.xlane.f32.xlu0 %v182_v34  ;;  %v612_v53 = vmax.f32 %v610_v44, %v1466_v49  ;;  %v633_v54 = vmax.f32 %v631_v45, %v1469_v50  ;;  %1932 = vst [vmem:[#allocation19_spill] sm:$0xff] %v1489_v60  ;;  %1933 = vst [vmem:[#allocation20_spill] sm:$0xff] %v1492_v61  ;;  %v1502_v6 = vld [vmem:[%s1358_s19 + $0xf0] sm:$0xff]  ;;  %v1505_v8 = vld [vmem:[%s1358_s19 + $0xf8] sm:$0xff]  ;;  %v650_v34 = vunpack.c.l.s4 %v1267_v30 }
  0x4b   : > { %v613_v56 = vmax.f32 %v611_v47, %v1472_v51  ;;  %186 = vmax.xlane.f32.xlu1 %v185_v39  ;;  %v634_v58 = vmax.f32 %v632_v48, %v1479_v55  ;;  %1934 = vst [vmem:[#allocation21_spill] sm:$0xff] %v1497_v0  ;;  %v206_v39 = vmax.f32 %v1472_v51, %v1479_v55  ;;  %v1529_v48 = vand.u32 127, %v1909_v18 }
  0x4c   : > { %v614_v62 = vmax.f32 %v612_v53, %v1486_v59  ;;  %v635_v63 = vmax.f32 %v633_v54, %v1489_v60  ;;  %v209_v45 = vmax.f32 %v1486_v59, %v1489_v60  ;;  %v651_v47 = vunpack.c.0.s8 %v650_v34 }
  0x4d   : > { %v615_v1 = vmax.f32 %v613_v56, %v1492_v61  ;;  %v636_v2 = vmax.f32 %v634_v58, %v1497_v0  ;;  %v433_v54 = vadd.s32 8, %v1521_v35  ;;  %v212_v56 = vmax.f32 %v1492_v61, %v1497_v0 }
  0x4e   : > { %189 = vmax.xlane.f32.xlu0 %v188_v52  ;;  %v616_v12 = vmax.f32 %v614_v62, %v1502_v6  ;;  %v637_v16 = vmax.f32 %v635_v63, %v1505_v8  ;;  %v215_v62 = vmax.f32 %v1502_v6, %v1505_v8  ;;  %v1540_v63 = vsub.s32 %v651_v47, %v1521_v35 }
  0x4f   : > { %192 = vmax.xlane.f32.xlu1 %v191_v57  ;;  %vm451_vm2 = vcmp.eq.s32.totalorder %v433_v54, %v1529_v48  ;;  %vm450_vm3 = vcmp.eq.s32.totalorder %v1521_v35, %v1529_v48 }
  0x50   : > { %v617_v20 = vmax.f32 %v615_v1, %v616_v12  ;;  %v638_v21 = vmax.f32 %v636_v2, %v637_v16  ;;  %v434_v12 = vadd.s32 16, %v1521_v35 }
  0x52   : > { %195 = vmax.xlane.f32.xlu0 %v194_v11  ;;  %v618_v26 = vrot.slane %v617_v20, 4  ;;  %v639_v27 = vrot.slane %v638_v21, 4  ;;  %v416_v11 = vld [vmem:[%s1533_s21 + $0x10] sm:$0xff]  ;;  %vm452_vm4 = vcmp.eq.s32.totalorder %v434_v12, %v1529_v48 }
  0x53   : > { %198 = vmax.xlane.f32.xlu1 %v197_v17  ;;  %v467_v17 = vsel %vm451_vm2, %v416_v11, 0.0 }
  0x54   : > { %v619_v36 = vmax.f32 %v617_v20, %v618_v26  ;;  %v640_v38 = vmax.f32 %v638_v21, %v639_v27  ;;  %v415_v20 = vld [vmem:[%s1533_s21] sm:$0xff]  ;;  %v435_v26 = vadd.s32 24, %v1521_v35 }
  0x55   : > { %v466_v27 = vsel %vm450_vm3, %v415_v20, 0.0 }
  0x56   : > { %201 = vmax.xlane.f32.xlu0 %v200_v22  ;;  %v620_v40 = vrot.slane %v619_v36, 2  ;;  %v641_v44 = vrot.slane %v640_v38, 2  ;;  %v417_v22 = vld [vmem:[%s1533_s21 + $0x20] sm:$0xff]  ;;  %vm453_vm6 = vcmp.eq.s32.totalorder %v435_v26, %v1529_v48 }
  0x57   : > { %204 = vmax.xlane.f32.xlu1 %v203_v29  ;;  %v1552_v29 = vld [vmem:[#allocation2] sm:$0x3] }
  0x58   : > { %v621_v52 = vmax.f32 %v619_v36, %v620_v40  ;;  %v642_v53 = vmax.f32 %v640_v38, %v641_v44  ;;  %v468_v36 = vsel %vm452_vm4, %v417_v22, 0.0  ;;  %v1908_v38 = vsub.s32 0, %v1521_v35  ;;  %v418_v44 = vld [vmem:[%s1533_s21 + $0x30] sm:$0xff] }
  0x59   : > { %vm552_vm4 = vcmask 7168  }
  0x5a   : > { %207 = vmax.xlane.f32.xlu0 %v206_v39  ;;  %v622_v57 = vrot.slane %v621_v52, 1  ;;  %v643_v58 = vrot.slane %v642_v53, 1  ;;  %v1907_v39 = vsub.s32 1, %v1521_v35 }
  0x5b   : > { %210 = vmax.xlane.f32.xlu1 %v209_v45  ;;  %v1570_v45 = vsel %vm453_vm6, %v418_v44, 0.0 }
  0x5c   : > { %v623_v1 = vmax.f32 %v621_v52, %v622_v57  ;;  %v644_v2 = vmax.f32 %v642_v53, %v643_v58  ;;  %v514_v58 = vadd.f32 %v467_v17, %v466_v27 }
  0x5e   : > { %213 = vmax.xlane.f32.xlu0 %v212_v56  ;;  %v648_v16 = vcombine.low %v623_v1, %v644_v2  ;;  %v515_v22 = vadd.f32 %v514_v58, %v468_v36 }
  0x5f   : > { %216 = vmax.xlane.f32.xlu1 %v215_v62 }
  0x60   : > { %v655_v21 = vrot.slane %v648_v16, %v1540_v63 }
  0x62   : > { %v662_v30 = vrot.slane %v655_v21, %v1540_v63  ;;  %484 = vadd.xlane.f32.xlu0 %v467_v17 }
  0x63   : > { %482 = vadd.xlane.f32.xlu1 %v466_v27 }
  0x64   : > { %v1563_v40 = vmax.f32 %v1552_v29, %v662_v30 }
  0x66   : > { %841 = vst.msk [vmem:[#allocation2] sm:$0x3] %vm1556_vm5, %v1563_v40  ;;  %486 = vadd.xlane.f32.xlu0 %v468_v36  ;;  %v1575_v47 = vrot.slane %v1563_v40, %v1908_v38  ;;  %v1580_v52 = vrot.slane %v1563_v40, %v1907_v39 }
  0x68   : > { %v681_v53 = vsub.f32 %v1366_v3, %v1575_v47  ;;  %v682_v54 = vsub.f32 %v1369_v4, %v1580_v52  ;;  %v683_v56 = vsub.f32 %v1382_v9, %v1575_v47  ;;  %v684_v57 = vsub.f32 %v1385_v10, %v1580_v52 }
  0x69   : > { %v685_v62 = vsub.f32 %v1372_v5, %v1575_v47  ;;  %v686_v1 = vsub.f32 %v1377_v7, %v1580_v52  ;;  %v687_v2 = vsub.f32 %v1392_v13, %v1575_v47  ;;  %v688_v16 = vsub.f32 %v1395_v14, %v1580_v52 }
  0x6a   : > { %488 = vadd.xlane.f32.xlu0 %v1570_v45  ;;  %v713_v11 = vmul.f32 1.442695, %v681_v53  ;;  %v715_v12 = vmul.f32 1.442695, %v682_v54  ;;  %v717_v20 = vmul.f32 1.442695, %v683_v56  ;;  %v689_v17 = vsub.f32 %v1398_v15, %v1575_v47 }
  0x6b   : > { %v719_v21 = vmul.f32 1.442695, %v684_v57  ;;  %v690_v26 = vsub.f32 %v1407_v19, %v1580_v52  ;;  %v721_v27 = vmul.f32 1.442695, %v685_v62  ;;  %v691_v30 = vsub.f32 %v1414_v23, %v1575_v47 }
  0x6c   : > { %1020 = vpow2.f32 %v713_v11  ;;  %v692_v44 = vsub.f32 %v1417_v24, %v1580_v52  ;;  %v723_v53 = vmul.f32 1.442695, %v686_v1  ;;  %v693_v54 = vsub.f32 %v1420_v25, %v1575_v47 }
  0x6d   : > { %1022 = vpow2.f32 %v715_v12  ;;  %v694_v36 = vsub.f32 %v1425_v28, %v1580_v52  ;;  %v725_v56 = vmul.f32 1.442695, %v687_v2  ;;  %v695_v57 = vsub.f32 %v1430_v31, %v1575_v47 }
  0x6e   : > { %1024 = vpow2.f32 %v717_v20  ;;  %v696_v58 = vsub.f32 %v1433_v32, %v1580_v52  ;;  %v727_v62 = vmul.f32 1.442695, %v688_v16  ;;  %v697_v11 = vsub.f32 %v1436_v33, %v1575_v47 }
  0x6f   : > { %1026 = vpow2.f32 %v719_v21  ;;  %v698_v1 = vsub.f32 %v1443_v37, %v1580_v52  ;;  %v729_v12 = vmul.f32 1.442695, %v689_v17  ;;  %v699_v20 = vsub.f32 %v1450_v41, %v1575_v47 }
  0x70   : > { %1028 = vpow2.f32 %v721_v27  ;;  %v700_v2 = vsub.f32 %v1453_v42, %v1580_v52  ;;  %v731_v39 = vmul.f32 1.442695, %v690_v26  ;;  %v701_v21 = vsub.f32 %v1456_v43, %v1575_v47 }
  0x71   : > { %1030 = vpow2.f32 %v723_v53  ;;  %v702_v16 = vsub.f32 %v1461_v46, %v1580_v52  ;;  %v733_v38 = vmul.f32 1.442695, %v691_v30  ;;  %v703_v27 = vsub.f32 %v1466_v49, %v1575_v47 }
  0x72   : > { %1032 = vpow2.f32 %v725_v56  ;;  %v704_v17 = vsub.f32 %v1469_v50, %v1580_v52  ;;  %v735_v18 = vmul.f32 1.442695, %v692_v44  ;;  %v705_v26 = vsub.f32 %v1472_v51, %v1575_v47  ;;  %v419_v51 = vld [vmem:[%s1533_s21 + $0x40] sm:$0xff] }
  0x73   : > { %1034 = vpow2.f32 %v727_v62  ;;  %v706_v53 = vsub.f32 %v1479_v55, %v1580_v52  ;;  %v737_v43 = vmul.f32 1.442695, %v693_v54  ;;  %v707_v30 = vsub.f32 %v1486_v59, %v1575_v47 }
  0x74   : > { %1036 = vpow2.f32 %v729_v12  ;;  %v739_v56 = vmul.f32 1.442695, %v694_v36  ;;  %v436_v49 = vadd.s32 32, %v1521_v35  ;;  %v708_v50 = vsub.f32 %v1489_v60, %v1580_v52 }
  0x75   : > { %1038 = vpow2.f32 %v731_v39  ;;  %v741_v44 = vmul.f32 1.442695, %v695_v57  ;;  %v743_v62 = vmul.f32 1.442695, %v696_v58  ;;  %v516_v12 = vadd.f32 %v515_v22, %v1570_v45 }
  0x76   : > { %1040 = vpow2.f32 %v733_v38  ;;  %vm454_vm7 = vcmp.eq.s32.totalorder %v436_v49, %v1529_v48  ;;  %v437_v54 = vadd.s32 40, %v1521_v35  ;;  %v709_v39 = vsub.f32 %v1492_v61, %v1575_v47 }
  0x77   : > { %1042 = vpow2.f32 %v735_v18  ;;  %v710_v36 = vsub.f32 %v1497_v0, %v1580_v52  ;;  %v745_v60 = vmul.f32 1.442695, %v697_v11  ;;  %v747_v45 = vmul.f32 1.442695, %v698_v1  ;;  %v420_v11 = vld [vmem:[%s1533_s21 + $0x50] sm:$0xff] }
  0x78   : > { %1044 = vpow2.f32 %v737_v43  ;;  %v749_v58 = vmul.f32 1.442695, %v699_v20  ;;  %v751_v59 = vmul.f32 1.442695, %v700_v2  ;;  %v1654_v61 = vsel %vm454_vm7, %v419_v51, 0.0 }
  0x79   : > { %v1021_v38 = vpop.eup %1020  ;;  %1046 = vpow2.f32 %v739_v56  ;;  %1937 = vst [vmem:[#allocation22_spill] sm:$0xff] %v1654_v61  ;;  %v517_v43 = vadd.f32 %v516_v12, %v1654_v61  ;;  %vm455_vm8 = vcmp.eq.s32.totalorder %v437_v54, %v1529_v48  ;;  %v438_v18 = vadd.s32 48, %v1521_v35 }
  0x7a   : > { %v1023_v22 = vpop.eup %1022  ;;  %1048 = vpow2.f32 %v741_v44  ;;  %v753_v1 = vmul.f32 1.442695, %v701_v21  ;;  %v755_v56 = vmul.f32 1.442695, %v702_v16  ;;  %v757_v49 = vmul.f32 1.442695, %v703_v27 }
  0x7b   : > { %v1025_v0 = vpop.eup %1024  ;;  %1050 = vpow2.f32 %v743_v62  ;;  %v759_v51 = vmul.f32 1.442695, %v704_v17  ;;  %v761_v62 = vmul.f32 1.442695, %v705_v26  ;;  %v1662_v61 = vsel %vm455_vm8, %v420_v11, 0.0  ;;  %v421_v16 = vld [vmem:[%s1533_s21 + $0x60] sm:$0xff] }
  0x7c   : > { %v1027_v57 = vpop.eup %1026  ;;  %1052 = vpow2.f32 %v745_v60  ;;  %v777_v20 = vadd.f32 %v1025_v0, %v1021_v38  ;;  %v518_v21 = vadd.f32 %v517_v43, %v1662_v61  ;;  %vm456_vm9 = vcmp.eq.s32.totalorder %v438_v18, %v1529_v48 }
  0x7d   : > { %v1029_v2 = vpop.eup %1028  ;;  %1054 = vpow2.f32 %v747_v45  ;;  %v798_v44 = vadd.f32 %v1027_v57, %v1023_v22  ;;  %v763_v27 = vmul.f32 1.442695, %v706_v53  ;;  %v440_v26 = vadd.s32 64, %v1521_v35  ;;  %v422_v53 = vld [vmem:[%s1533_s21 + $0x70] sm:$0xff] }
  0x7e   : > { %v1031_v55 = vpop.eup %1030  ;;  %1056 = vpow2.f32 %v749_v58  ;;  %v778_v12 = vadd.f32 %v1029_v2, %v777_v20  ;;  %v765_v54 = vmul.f32 1.442695, %v707_v30  ;;  %v767_v57 = vmul.f32 1.442695, %v708_v50  ;;  %v423_v20 = vld [vmem:[%s1533_s21 + $0x80] sm:$0xff] }
  0x7f   : > { %v1033_v46 = vpop.eup %1032  ;;  %1058 = vpow2.f32 %v751_v59  ;;  %v799_v60 = vadd.f32 %v1031_v55, %v798_v44  ;;  %v769_v55 = vmul.f32 1.442695, %v709_v39  ;;  %v1668_v58 = vsel %vm456_vm9, %v421_v16, 0.0 }
  0x80   : > { %v1035_v0 = vpop.eup %1034  ;;  %1060 = vpow2.f32 %v753_v1  ;;  %v779_v17 = vadd.f32 %v1033_v46, %v778_v12  ;;  %v519_v46 = vadd.f32 %v518_v21, %v1668_v58  ;;  %v439_v11 = vadd.s32 56, %v1521_v35 }
  0x81   : > { %v1037_v38 = vpop.eup %1036  ;;  %1062 = vpow2.f32 %v755_v56  ;;  %v800_v45 = vadd.f32 %v1035_v0, %v799_v60  ;;  %v771_v30 = vmul.f32 1.442695, %v710_v36  ;;  %vm458_vm10 = vcmp.eq.s32.totalorder %v440_v26, %v1529_v48 }
  0x82   : > { %v1039_v22 = vpop.eup %1038  ;;  %1064 = vpow2.f32 %v757_v49  ;;  %v780_v59 = vadd.f32 %v1037_v38, %v779_v17  ;;  %v442_v2 = vadd.s32 80, %v1521_v35  ;;  %vm457_vm11 = vcmp.eq.s32.totalorder %v439_v11, %v1529_v48  ;;  %v424_v38 = vld [vmem:[%s1533_s21 + $0x90] sm:$0xff] }
  0x83   : > { %v1041_v18 = vpop.eup %1040  ;;  %1066 = vpow2.f32 %v759_v51  ;;  %v801_v43 = vadd.f32 %v1039_v22, %v800_v45  ;;  %v1938_v51 = vsub.f32 %v1502_v6, %v1575_v47  ;;  %v1680_v36 = vsel %vm457_vm11, %v422_v53, 0.0 }
  0x84   : > { %v1043_v1 = vpop.eup %1042  ;;  %1068 = vpow2.f32 %v761_v62  ;;  %v781_v50 = vadd.f32 %v1041_v18, %v780_v59  ;;  %v1939_v60 = vsub.f32 %v1505_v8, %v1580_v52  ;;  %v520_v0 = vadd.f32 %v519_v46, %v1680_v36 }
  0x85   : > { %v1045_v56 = vpop.eup %1044  ;;  %1070 = vpow2.f32 %v763_v27  ;;  %v802_v39 = vadd.f32 %v1043_v1, %v801_v43  ;;  %v773_v44 = vmul.f32 1.442695, %v1938_v51  ;;  %v1688_v47 = vsel %vm458_vm10, %v423_v20, 0.0 }
  0x86   : > { %v1047_v49 = vpop.eup %1046  ;;  %1072 = vpow2.f32 %v765_v54  ;;  %v782_v62 = vadd.f32 %v1045_v56, %v781_v50  ;;  %v775_v21 = vmul.f32 1.442695, %v1939_v60  ;;  %v441_v54 = vadd.s32 72, %v1521_v35  ;;  %v426_v50 = vld [vmem:[%s1533_s21 + $0xb0] sm:$0xff] }
  0x87   : > { %v1049_v12 = vpop.eup %1048  ;;  %1074 = vpow2.f32 %v767_v57  ;;  %v803_v16 = vadd.f32 %v1047_v49, %v802_v39  ;;  %vm460_vm12 = vcmp.eq.s32.totalorder %v442_v2, %v1529_v48  ;;  %v521_v52 = vadd.f32 %v520_v0, %v1688_v47 }
  0x88   : > { %v1051_v27 = vpop.eup %1050  ;;  %1076 = vpow2.f32 %v769_v55  ;;  %v783_v17 = vadd.f32 %v1049_v12, %v782_v62  ;;  %v425_v55 = vld [vmem:[%s1533_s21 + $0xa0] sm:$0xff]  ;;  %v444_v18 = vadd.s32 96, %v1521_v35  ;;  %vm459_vm13 = vcmp.eq.s32.totalorder %v441_v54, %v1529_v48 }
  0x89   : > { %v1053_v45 = vpop.eup %1052  ;;  %1078 = vpow2.f32 %v771_v30  ;;  %v804_v57 = vadd.f32 %v1051_v27, %v803_v16  ;;  %v1697_v46 = vsel %vm459_vm13, %v424_v38, 0.0  ;;  %v443_v53 = vadd.s32 88, %v1521_v35  ;;  %v428_v38 = vld [vmem:[%s1533_s21 + $0xd0] sm:$0xff] }
  0x8a   : > { %v1055_v22 = vpop.eup %1054  ;;  %1080 = vpow2.f32 %v773_v44  ;;  %v784_v59 = vadd.f32 %v1053_v45, %v783_v17  ;;  %v522_v30 = vadd.f32 %v521_v52, %v1697_v46  ;;  %v1704_v20 = vsel %vm460_vm12, %v425_v55, 0.0  ;;  %v427_v44 = vld [vmem:[%s1533_s21 + $0xc0] sm:$0xff] }
  0x8b   : > { %v1057_v26 = vpop.eup %1056  ;;  %1082 = vpow2.f32 %v775_v21  ;;  %v805_v43 = vadd.f32 %v1055_v22, %v804_v57  ;;  %vm461_vm14 = vcmp.eq.s32.totalorder %v443_v53, %v1529_v48  ;;  %vm462_vm15 = vcmp.eq.s32.totalorder %v444_v18, %v1529_v48  ;;  %v429_v55 = vld [vmem:[%s1533_s21 + $0xe0] sm:$0xff] }
  0x8c   : > { %v1059_v11 = vpop.eup %1058  ;;  %v785_v1 = vadd.f32 %v1057_v26, %v784_v59  ;;  %v523_v62 = vadd.f32 %v522_v30, %v1704_v20  ;;  %v446_v12 = vadd.s32 112, %v1521_v35  ;;  %v1711_v16 = vsel %vm461_vm14, %v426_v50, 0.0  ;;  %v430_v30 = vld [vmem:[%s1533_s21 + $0xf0] sm:$0xff] }
  0x8d   : > { %v1061_v56 = vpop.eup %1060  ;;  %v806_v39 = vadd.f32 %v1059_v11, %v805_v43  ;;  %v445_v2 = vadd.s32 104, %v1521_v35  ;;  %v666_v45 = vsub.f32 %v1552_v29, %v1563_v40  ;;  %v1718_v52 = vsel %vm462_vm15, %v427_v44, 0.0 }
  0x8e   : > { %v1063_v49 = vpop.eup %1062  ;;  %v786_v51 = vadd.f32 %v1061_v56, %v785_v1  ;;  %v524_v17 = vadd.f32 %v523_v62, %v1711_v16  ;;  %vm464_vm1 = vcmp.eq.s32.totalorder %v446_v12, %v1529_v48  ;;  %v447_v11 = vadd.s32 120, %v1521_v35 }
  0x8f   : > { %v1065_v60 = vpop.eup %1064  ;;  %v807_v21 = vadd.f32 %v1063_v49, %v806_v39  ;;  %vm463_vm0 = vcmp.eq.s32.totalorder %v445_v2, %v1529_v48  ;;  %v667_v56 = vmul.f32 1.442695, %v666_v45  ;;  %v1729_v49 = vsel %vm464_vm1, %v429_v55, 0.0 }
  0x90   : > { %v1067_v0 = vpop.eup %1066  ;;  %v787_v27 = vadd.f32 %v1065_v60, %v786_v51  ;;  %v525_v18 = vadd.f32 %v524_v17, %v1718_v52  ;;  %v1724_v53 = vsel %vm463_vm0, %v428_v38, 0.0  ;;  %vm465_vm2 = vcmp.eq.s32.totalorder %v447_v11, %v1529_v48 }
  0x91   : > { %v1069_v54 = vpop.eup %1068  ;;  %v808_v57 = vadd.f32 %v1067_v0, %v807_v21  ;;  %v1733_v21 = vsel %vm465_vm2, %v430_v30, 0.0  ;;  %1084 = vpow2.f32 %v667_v56  ;;  %v1940_v30 = vlaneseq }
  0x92   : > { %v1071_v22 = vpop.eup %1070  ;;  %v788_v59 = vadd.f32 %v1069_v54, %v787_v27  ;;  %v526_v1 = vadd.f32 %v525_v18, %v1724_v53 }
  0x93   : > { %v1073_v26 = vpop.eup %1072  ;;  %v809_v43 = vadd.f32 %v1071_v22, %v808_v57  ;;  %vm600_vm3 = vcmp.lt.s32.totalorder %v1940_v30, 128 }
  0x94   : > { %v1075_v29 = vpop.eup %1074  ;;  %v789_v40 = vadd.f32 %v1073_v26, %v788_v59  ;;  %v527_v62 = vadd.f32 %v526_v1, %v1729_v49 }
  0x95   : > { %v1077_v50 = vpop.eup %1076  ;;  %v810_v39 = vadd.f32 %v1075_v29, %v809_v43 }
  0x96   : > { %v1079_v51 = vpop.eup %1078  ;;  %v790_v44 = vadd.f32 %v1077_v50, %v789_v40  ;;  %v528_v27 = vadd.f32 %v527_v62, %v1733_v21 }
  0x97   : > { %v1081_v12 = vpop.eup %1080  ;;  %v811_v60 = vadd.f32 %v1079_v51, %v810_v39 }
  0x98   : > { %v1083_v2 = vpop.eup %1082  ;;  %v791_v0 = vadd.f32 %v1081_v12, %v790_v44  ;;  %v529_v54 = vrot.slane %v528_v27, 4  ;;  %v665_v44 = vld [vmem:[#allocation3] sm:$0x3] }
  0x99   : > { %v812_v17 = vadd.f32 %v1083_v2, %v811_v60 }
  0x9a   : > { %v792_v38 = vrot.slane %v791_v0, 4  ;;  %v530_v22 = vadd.f32 %v529_v54, %v528_v27 }
  0x9b   : > { %v813_v45 = vrot.slane %v812_v17, 4 }
  0x9c   : > { %v793_v57 = vadd.f32 %v792_v38, %v791_v0  ;;  %v531_v55 = vrot.slane %v530_v22, 2 }
  0x9d   : > { %v814_v48 = vadd.f32 %v813_v45, %v812_v17 }
  0x9e   : > { %v794_v59 = vrot.slane %v793_v57, 2  ;;  %v532_v43 = vadd.f32 %v531_v55, %v530_v22  ;;  %v1085_v51 = vpop.eup %1084 }
  0x9f   : > { %v815_v18 = vrot.slane %v814_v48, 2  ;;  %v669_v12 = vmul.f32 %v1085_v51, %v665_v44 }
  0xa0   : > { %v795_v26 = vadd.f32 %v794_v59, %v793_v57  ;;  %v533_v40 = vrot.slane %v532_v43, 1 }
  0xa1   : > { %v816_v11 = vadd.f32 %v815_v18, %v814_v48 }
  0xa2   : > { %v796_v29 = vrot.slane %v795_v26, 1  ;;  %v534_v56 = vadd.f32 %v533_v40, %v532_v43 }
  0xa3   : > { %v817_v1 = vrot.slane %v816_v11, 1 }
  0xa4   : > { %v797_v50 = vadd.f32 %v796_v29, %v795_v26  ;;  %602 = vst.msk [vmem:[%s597_s22] sm:$0x1] %vm600_vm3, %v534_v56 }
  0xa5   : > { %v818_v39 = vadd.f32 %v817_v1, %v816_v11 }
  0xa7   : > { %v821_v62 = vcombine.low %v797_v50, %v818_v39 }
  0xa9   : > { %v828_v60 = vrot.slane %v821_v62, %v1540_v63 }
  0xab   : > { %v835_v2 = vrot.slane %v828_v60, %v1540_v63 }
  0xad   : > { %v837_v0 = vadd.f32 %v835_v2, %v669_v12 }
  0xaf   : > { %840 = vst.msk [vmem:[#allocation3] sm:$0x3] %vm1556_vm5, %v837_v0  ;;  %vm595_vm5 = vcmask 0  }
  0xcb   : > { %v1742_v27 = vpop.xlane.xlu0 %171 }
  0xcc   : > { %v218_v17 = vsub.f32 %v1366_v3, %v1742_v27  ;;  %v219_v38 = vsub.f32 %v1369_v4, %v1742_v27  ;;  %v1748_v54 = vpop.xlane.xlu1 %177 }
  0xcd   : > { %v222_v45 = vsub.f32 %v1372_v5, %v1748_v54  ;;  %v223_v63 = vsub.f32 %v1377_v7, %v1748_v54 }
  0xce   : > { %v250_v57 = vmul.f32 1.442695, %v218_v17  ;;  %v252_v22 = vmul.f32 1.442695, %v219_v38 }
  0xcf   : > { %v258_v34 = vmul.f32 1.442695, %v222_v45  ;;  %v260_v48 = vmul.f32 1.442695, %v223_v63  ;;  %v1754_v59 = vpop.xlane.xlu0 %174 }
  0xd0   : > { %1086 = vpow2.f32 %v250_v57  ;;  %v220_v3 = vsub.f32 %v1382_v9, %v1754_v59  ;;  %v221_v4 = vsub.f32 %v1385_v10, %v1754_v59  ;;  %v1760_v55 = vpop.xlane.xlu1 %180 }
  0xd1   : > { %1088 = vpow2.f32 %v252_v22  ;;  %v224_v5 = vsub.f32 %v1392_v13, %v1760_v55  ;;  %v225_v7 = vsub.f32 %v1395_v14, %v1760_v55 }
  0xd2   : > { %1090 = vpow2.f32 %v258_v34  ;;  %v254_v18 = vmul.f32 1.442695, %v220_v3  ;;  %v256_v26 = vmul.f32 1.442695, %v221_v4  ;;  %v1941_v3 = vld [vmem:[#allocation12_spill] sm:$0xff] }
  0xd3   : > { %1092 = vpow2.f32 %v260_v48  ;;  %v262_v43 = vmul.f32 1.442695, %v224_v5  ;;  %v264_v11 = vmul.f32 1.442695, %v225_v7  ;;  %v1766_v29 = vpop.xlane.xlu0 %183 }
  0xd4   : > { %1094 = vpow2.f32 %v254_v18  ;;  %v226_v9 = vsub.f32 %v1398_v15, %v1766_v29  ;;  %v227_v10 = vsub.f32 %v1407_v19, %v1766_v29  ;;  %v1772_v40 = vpop.xlane.xlu1 %186  ;;  %v1943_v18 = vld [vmem:[#allocation14_spill] sm:$0xff] }
  0xd5   : > { %1096 = vpow2.f32 %v256_v26  ;;  %v228_v13 = vsub.f32 %v1414_v23, %v1772_v40  ;;  %v229_v14 = vsub.f32 %v1417_v24, %v1772_v40 }
  0xd6   : > { %1098 = vpow2.f32 %v262_v43  ;;  %v266_v1 = vmul.f32 1.442695, %v226_v9  ;;  %v268_v30 = vmul.f32 1.442695, %v227_v10  ;;  %v1944_v43 = vld [vmem:[#allocation15_spill] sm:$0xff] }
  0xd7   : > { %1100 = vpow2.f32 %v264_v11  ;;  %v270_v50 = vmul.f32 1.442695, %v228_v13  ;;  %v272_v56 = vmul.f32 1.442695, %v229_v14  ;;  %v1778_v39 = vpop.xlane.xlu0 %189 }
  0xd8   : > { %1102 = vpow2.f32 %v266_v1  ;;  %v230_v15 = vsub.f32 %v1420_v25, %v1778_v39  ;;  %v231_v19 = vsub.f32 %v1425_v28, %v1778_v39  ;;  %v1784_v51 = vpop.xlane.xlu1 %192 }
  0xd9   : > { %1104 = vpow2.f32 %v268_v30  ;;  %v232_v23 = vsub.f32 %v1430_v31, %v1784_v51  ;;  %v233_v24 = vsub.f32 %v1433_v32, %v1784_v51 }
  0xda   : > { %1106 = vpow2.f32 %v270_v50  ;;  %v274_v44 = vmul.f32 1.442695, %v230_v15  ;;  %v276_v62 = vmul.f32 1.442695, %v231_v19 }
  0xdb   : > { %1108 = vpow2.f32 %v272_v56  ;;  %v278_v12 = vmul.f32 1.442695, %v232_v23  ;;  %v280_v60 = vmul.f32 1.442695, %v233_v24  ;;  %v1790_v2 = vpop.xlane.xlu0 %195  ;;  %v1945_v23 = vld [vmem:[#allocation16_spill] sm:$0xff] }
  0xdc   : > { %1110 = vpow2.f32 %v274_v44  ;;  %v234_v25 = vsub.f32 %v1436_v33, %v1790_v2  ;;  %v235_v28 = vsub.f32 %v1443_v37, %v1790_v2  ;;  %v1796_v0 = vpop.xlane.xlu1 %198  ;;  %v1946_v44 = vld [vmem:[#allocation17_spill] sm:$0xff] }
  0xdd   : > { %v1087_v31 = vpop.eup %1086  ;;  %1112 = vpow2.f32 %v276_v62  ;;  %v236_v32 = vsub.f32 %v1450_v41, %v1796_v0  ;;  %v237_v17 = vsub.f32 %v1453_v42, %v1796_v0  ;;  %v1942_v41 = vld [vmem:[#allocation13_spill] sm:$0xff] }
  0xde   : > { %v1089_v38 = vpop.eup %1088  ;;  %1114 = vpow2.f32 %v278_v12  ;;  %v282_v45 = vmul.f32 1.442695, %v234_v25  ;;  %v284_v63 = vmul.f32 1.442695, %v235_v28  ;;  %v1947_v28 = vld [vmem:[#allocation18_spill] sm:$0xff] }
  0xdf   : > { %v1091_v57 = vpop.eup %1090  ;;  %1116 = vpow2.f32 %v280_v60  ;;  %v286_v33 = vmul.f32 1.442695, %v236_v32  ;;  %v288_v22 = vmul.f32 1.442695, %v237_v17  ;;  %v1802_v34 = vpop.xlane.xlu0 %201  ;;  %v314_v37 = vadd.f32 %v1089_v38, %v1087_v31  ;;  %v1948_v32 = vld [vmem:[#allocation19_spill] sm:$0xff] }
  0xe0   : > { %v1093_v48 = vpop.eup %1092  ;;  %1118 = vpow2.f32 %v282_v45  ;;  %v238_v4 = vsub.f32 %v1941_v3, %v1802_v34  ;;  %v239_v5 = vsub.f32 %v1942_v41, %v1802_v34  ;;  %v1808_v42 = vpop.xlane.xlu1 %204  ;;  %v1949_v3 = vld [vmem:[#allocation20_spill] sm:$0xff] }
  0xe1   : > { %v1095_v7 = vpop.eup %1094  ;;  %1120 = vpow2.f32 %v284_v63  ;;  %315 = vadd.xlane.f32.xlu0 %v314_v37  ;;  %v240_v26 = vsub.f32 %v1943_v18, %v1808_v42  ;;  %v241_v11 = vsub.f32 %v1944_v43, %v1808_v42  ;;  %v320_v9 = vadd.f32 %v1093_v48, %v1091_v57  ;;  %v1950_v18 = vld [vmem:[#allocation21_spill] sm:$0xff] }
  0xe2   : > { %v1097_v10 = vpop.eup %1096  ;;  %1122 = vpow2.f32 %v286_v33  ;;  %v290_v13 = vmul.f32 1.442695, %v238_v4  ;;  %v292_v14 = vmul.f32 1.442695, %v239_v5 }
  0xe3   : > { %v1099_v1 = vpop.eup %1098  ;;  %1124 = vpow2.f32 %v288_v22  ;;  %v294_v30 = vmul.f32 1.442695, %v240_v26  ;;  %v296_v50 = vmul.f32 1.442695, %v241_v11  ;;  %v317_v56 = vadd.f32 %v1097_v10, %v1095_v7  ;;  %v1814_v15 = vpop.xlane.xlu0 %207 }
  0xe4   : > { %v1101_v19 = vpop.eup %1100  ;;  %1126 = vpow2.f32 %v290_v13  ;;  %v242_v24 = vsub.f32 %v1945_v23, %v1814_v15  ;;  %v243_v62 = vsub.f32 %v1946_v44, %v1814_v15  ;;  %v1820_v12 = vpop.xlane.xlu1 %210 }
  0xe5   : > { %v1103_v60 = vpop.eup %1102  ;;  %1128 = vpow2.f32 %v292_v14  ;;  %321 = vadd.xlane.f32.xlu0 %v320_v9  ;;  %318 = vadd.xlane.f32.xlu1 %v317_v56  ;;  %v323_v25 = vadd.f32 %v1101_v19, %v1099_v1  ;;  %v244_v31 = vsub.f32 %v1947_v28, %v1820_v12  ;;  %v245_v17 = vsub.f32 %v1948_v32, %v1820_v12 }
  0xe6   : > { %v1105_v38 = vpop.eup %1104  ;;  %1130 = vpow2.f32 %v294_v30  ;;  %v298_v45 = vmul.f32 1.442695, %v242_v24  ;;  %v300_v63 = vmul.f32 1.442695, %v243_v62 }
  0xe7   : > { %v1107_v57 = vpop.eup %1106  ;;  %1132 = vpow2.f32 %v296_v50  ;;  %v326_v33 = vadd.f32 %v1105_v38, %v1103_v60  ;;  %v1826_v22 = vpop.xlane.xlu0 %213  ;;  %v302_v48 = vmul.f32 1.442695, %v244_v31  ;;  %v304_v5 = vmul.f32 1.442695, %v245_v17 }
  0xe8   : > { %v1109_v37 = vpop.eup %1108  ;;  %1134 = vpow2.f32 %v298_v45  ;;  %v246_v4 = vsub.f32 %v1949_v3, %v1826_v22  ;;  %v247_v26 = vsub.f32 %v1950_v18, %v1826_v22  ;;  %v1832_v43 = vpop.xlane.xlu1 %216 }
  0xe9   : > { %v1111_v41 = vpop.eup %1110  ;;  %1136 = vpow2.f32 %v300_v63  ;;  %324 = vadd.xlane.f32.xlu1 %v323_v25  ;;  %327 = vadd.xlane.f32.xlu0 %v326_v33  ;;  %v329_v7 = vadd.f32 %v1109_v37, %v1107_v57  ;;  %v248_v1 = vsub.f32 %v1502_v6, %v1832_v43  ;;  %v249_v19 = vsub.f32 %v1505_v8, %v1832_v43  ;;  %v1951_v33 = vld [vmem:[#allocation22_spill] sm:$0xff] }
  0xea   : > { %v1113_v11 = vpop.eup %1112  ;;  %1138 = vpow2.f32 %v302_v48  ;;  %v306_v14 = vmul.f32 1.442695, %v246_v4  ;;  %v308_v50 = vmul.f32 1.442695, %v247_v26 }
  0xeb   : > { %v1115_v9 = vpop.eup %1114  ;;  %v332_v10 = vadd.f32 %v1113_v11, %v1111_v41  ;;  %1140 = vpow2.f32 %v304_v5  ;;  %v310_v60 = vmul.f32 1.442695, %v248_v1  ;;  %v312_v6 = vmul.f32 1.442695, %v249_v19 }
  0xec   : > { %v1117_v13 = vpop.eup %1116  ;;  %1142 = vpow2.f32 %v306_v14  ;;  %v483_v11 = vpop.xlane.xlu1 %482 }
  0xed   : > { %v1119_v30 = vpop.eup %1118  ;;  %330 = vadd.xlane.f32.xlu1 %v329_v7  ;;  %333 = vadd.xlane.f32.xlu0 %v332_v10  ;;  %v335_v56 = vadd.f32 %v1117_v13, %v1115_v9  ;;  %1144 = vpow2.f32 %v308_v50 }
  0xee   : > { %v1121_v23 = vpop.eup %1120  ;;  %1146 = vpow2.f32 %v310_v60 }
  0xef   : > { %v1123_v24 = vpop.eup %1122  ;;  %v338_v44 = vadd.f32 %v1121_v23, %v1119_v30  ;;  %1148 = vpow2.f32 %v312_v6 }
  0xf0   : > { %v1125_v62 = vpop.eup %1124 }
  0xf1   : > { %v1127_v25 = vpop.eup %1126  ;;  %336 = vadd.xlane.f32.xlu1 %v335_v56  ;;  %339 = vadd.xlane.f32.xlu0 %v338_v44  ;;  %v341_v28 = vadd.f32 %v1125_v62, %v1123_v24 }
  0xf2   : > { %v1129_v31 = vpop.eup %1128 }
  0xf3   : > { %v1131_v32 = vpop.eup %1130  ;;  %v344_v17 = vadd.f32 %v1129_v31, %v1127_v25 }
  0xf4   : > { %v1133_v38 = vpop.eup %1132 }
  0xf5   : > { %v1135_v45 = vpop.eup %1134  ;;  %342 = vadd.xlane.f32.xlu1 %v341_v28  ;;  %345 = vadd.xlane.f32.xlu0 %v344_v17  ;;  %v347_v8 = vadd.f32 %v1133_v38, %v1131_v32 }
  0xf6   : > { %v1137_v63 = vpop.eup %1136 }
  0xf7   : > { %v1139_v57 = vpop.eup %1138  ;;  %v350_v37 = vadd.f32 %v1137_v63, %v1135_v45 }
  0xf8   : > { %v1141_v48 = vpop.eup %1140 }
  0xf9   : > { %348 = vadd.xlane.f32.xlu1 %v347_v8  ;;  %490 = vadd.xlane.f32.xlu0 %v1951_v33  ;;  %v1143_v3 = vpop.eup %1142  ;;  %v353_v4 = vadd.f32 %v1141_v48, %v1139_v57 }
  0xfa   : > { %v1145_v41 = vpop.eup %1144 }
  0xfb   : > { %v1147_v5 = vpop.eup %1146  ;;  %v356_v7 = vadd.f32 %v1145_v41, %v1143_v3 }
  0xfc   : > { %v1149_v18 = vpop.eup %1148 }
  0xfd   : > { %492 = vadd.xlane.f32.xlu0 %v1662_v61  ;;  %351 = vadd.xlane.f32.xlu1 %v350_v37  ;;  %v359_v26 = vadd.f32 %v1149_v18, %v1147_v5  ;;  %v485_v61 = vpop.xlane.xlu0 %484 }
 0x101   : > { %494 = vadd.xlane.f32.xlu0 %v1668_v58  ;;  %354 = vadd.xlane.f32.xlu1 %v353_v4  ;;  %v487_v58 = vpop.xlane.xlu0 %486 }
 0x105   : > { %498 = vadd.xlane.f32.xlu0 %v1688_v47  ;;  %357 = vadd.xlane.f32.xlu1 %v356_v7  ;;  %v489_v47 = vpop.xlane.xlu0 %488 }
 0x109   : > { %502 = vadd.xlane.f32.xlu0 %v1704_v20  ;;  %360 = vadd.xlane.f32.xlu1 %v359_v26 }
 0x10d   : > { %496 = vadd.xlane.f32.xlu1 %v1680_v36  ;;  %506 = vadd.xlane.f32.xlu0 %v1718_v52 }
 0x111   : > { %500 = vadd.xlane.f32.xlu1 %v1697_v46  ;;  %510 = vadd.xlane.f32.xlu0 %v1729_v49 }
 0x115   : > { %504 = vadd.xlane.f32.xlu1 %v1711_v16 }
 0x119   : > { %508 = vadd.xlane.f32.xlu1 %v1724_v53 }
 0x11d   : > { %512 = vadd.xlane.f32.xlu1 %v1733_v21 }
 0x16a   : > { %v316_v20 = vpop.xlane.xlu0 %315 }
 0x16b   : > { %1150 = vlog2.f32 %v316_v20 }
 0x16e   : > { %v319_v9 = vpop.xlane.xlu1 %318  ;;  %v322_v36 = vpop.xlane.xlu0 %321 }
 0x16f   : > { %1152 = vlog2.f32 %v319_v9 }
 0x170   : > { %1154 = vlog2.f32 %v322_v36 }
 0x172   : > { %v325_v52 = vpop.xlane.xlu1 %324  ;;  %v328_v46 = vpop.xlane.xlu0 %327 }
 0x173   : > { %1156 = vlog2.f32 %v325_v52 }
 0x174   : > { %1158 = vlog2.f32 %v328_v46 }
 0x176   : > { %v331_v49 = vpop.xlane.xlu1 %330  ;;  %v334_v16 = vpop.xlane.xlu0 %333 }
 0x177   : > { %1160 = vlog2.f32 %v331_v49 }
 0x178   : > { %v1151_v53 = vpop.eup %1150  ;;  %1162 = vlog2.f32 %v334_v16 }
 0x179   : > { %v363_v10 = vmul.f32 0.6931472, %v1151_v53 }
 0x17a   : > { %v337_v21 = vpop.xlane.xlu1 %336  ;;  %v340_v13 = vpop.xlane.xlu0 %339 }
 0x17b   : > { %v394_v14 = vadd.f32 %v363_v10, %v1742_v27  ;;  %1164 = vlog2.f32 %v337_v21 }
 0x17c   : > { %v1153_v1 = vpop.eup %1152  ;;  %1166 = vlog2.f32 %v340_v13 }
 0x17d   : > { %v1155_v30 = vpop.eup %1154  ;;  %v365_v50 = vmul.f32 0.6931472, %v1153_v1  ;;  %v536_v56 = vsub.f32 %v394_v14, %v483_v11 }
 0x17e   : > { %v367_v19 = vmul.f32 0.6931472, %v1155_v30  ;;  %v343_v23 = vpop.xlane.xlu1 %342  ;;  %v346_v24 = vpop.xlane.xlu0 %345 }
 0x17f   : > { %v395_v44 = vadd.f32 %v365_v50, %v1754_v59  ;;  %v553_v27 = vsel %vm552_vm4, %v536_v56, 0.0  ;;  %1168 = vlog2.f32 %v343_v23 }
 0x180   : > { %v1157_v62 = vpop.eup %1156  ;;  %v396_v60 = vadd.f32 %v367_v19, %v1748_v54  ;;  %1170 = vlog2.f32 %v346_v24 }
 0x181   : > { %v1159_v25 = vpop.eup %1158  ;;  %v537_v6 = vsub.f32 %v395_v44, %v485_v61  ;;  %v369_v28 = vmul.f32 0.6931472, %v1157_v62 }
 0x182   : > { %v349_v31 = vpop.xlane.xlu1 %348  ;;  %v491_v32 = vpop.xlane.xlu0 %490  ;;  %v538_v38 = vsub.f32 %v396_v60, %v487_v58  ;;  %v371_v8 = vmul.f32 0.6931472, %v1159_v25 }
 0x183   : > { %v554_v17 = vsel %vm552_vm4, %v537_v6, 0.0  ;;  %v397_v45 = vadd.f32 %v369_v28, %v1760_v55 }
 0x184   : > { %v1161_v63 = vpop.eup %1160  ;;  %v555_v59 = vadd.f32 %v554_v17, %v553_v27  ;;  %v398_v48 = vadd.f32 %v371_v8, %v1766_v29  ;;  %v556_v3 = vsel %vm552_vm4, %v538_v38, 0.0 }
 0x185   : > { %v539_v57 = vsub.f32 %v397_v45, %v489_v47  ;;  %v373_v54 = vmul.f32 0.6931472, %v1161_v63  ;;  %v1163_v4 = vpop.eup %1162 }
 0x186   : > { %v352_v33 = vpop.xlane.xlu1 %351  ;;  %v493_v37 = vpop.xlane.xlu0 %492  ;;  %v557_v41 = vadd.f32 %v556_v3, %v555_v59  ;;  %v375_v18 = vmul.f32 0.6931472, %v1163_v4  ;;  %v540_v26 = vsub.f32 %v398_v48, %v491_v32 }
 0x187   : > { %1172 = vlog2.f32 %v352_v33  ;;  %v558_v5 = vsel %vm552_vm4, %v539_v57, 0.0  ;;  %v399_v55 = vadd.f32 %v373_v54, %v1772_v40 }
 0x188   : > { %1174 = vlog2.f32 %v349_v31  ;;  %v559_v61 = vadd.f32 %v558_v5, %v557_v41  ;;  %v1165_v47 = vpop.eup %1164  ;;  %v560_v9 = vsel %vm552_vm4, %v540_v26, 0.0  ;;  %v400_v36 = vadd.f32 %v375_v18, %v1778_v39 }
 0x189   : > { %v541_v11 = vsub.f32 %v399_v55, %v493_v37  ;;  %v1167_v20 = vpop.eup %1166  ;;  %v377_v52 = vmul.f32 0.6931472, %v1165_v47 }
 0x18a   : > { %v355_v7 = vpop.xlane.xlu1 %354  ;;  %v495_v58 = vpop.xlane.xlu0 %494  ;;  %v561_v46 = vadd.f32 %v560_v9, %v559_v61  ;;  %v379_v16 = vmul.f32 0.6931472, %v1167_v20 }
 0x18b   : > { %1176 = vlog2.f32 %v355_v7  ;;  %v562_v40 = vsel %vm552_vm4, %v541_v11, 0.0  ;;  %v542_v53 = vsub.f32 %v400_v36, %v495_v58  ;;  %v401_v30 = vadd.f32 %v377_v52, %v1784_v51 }
 0x18c   : > { %v1169_v49 = vpop.eup %1168  ;;  %v563_v1 = vadd.f32 %v562_v40, %v561_v46  ;;  %v402_v19 = vadd.f32 %v379_v16, %v1790_v2 }
 0x18d   : > { %v1171_v10 = vpop.eup %1170  ;;  %v381_v50 = vmul.f32 0.6931472, %v1169_v49  ;;  %v564_v39 = vsel %vm552_vm4, %v542_v53, 0.0 }
 0x18e   : > { %v358_v29 = vpop.xlane.xlu1 %357  ;;  %v499_v21 = vpop.xlane.xlu0 %498  ;;  %v383_v56 = vmul.f32 0.6931472, %v1171_v10  ;;  %v565_v25 = vadd.f32 %v564_v39, %v563_v1 }
 0x18f   : > { %1178 = vlog2.f32 %v358_v29  ;;  %v544_v62 = vsub.f32 %v402_v19, %v499_v21  ;;  %v403_v51 = vadd.f32 %v381_v50, %v1796_v0 }
 0x190   : > { %v404_v27 = vadd.f32 %v383_v56, %v1802_v34  ;;  %v535_v56 = vld [vmem:[#allocation5] sm:$0x1] }
 0x191   : > { %v568_v45 = vsel %vm552_vm4, %v544_v62, 0.0 }
 0x192   : > { %v361_v13 = vpop.xlane.xlu1 %360  ;;  %v503_v6 = vpop.xlane.xlu0 %502 }
 0x193   : > { %1180 = vlog2.f32 %v361_v13  ;;  %v546_v2 = vsub.f32 %v404_v27, %v503_v6 }
 0x194   : > { %v1173_v14 = vpop.eup %1172 }
 0x195   : > { %v1175_v23 = vpop.eup %1174  ;;  %v387_v44 = vmul.f32 0.6931472, %v1173_v14  ;;  %v572_v4 = vsel %vm552_vm4, %v546_v2, 0.0 }
 0x196   : > { %v497_v24 = vpop.xlane.xlu1 %496  ;;  %v385_v28 = vmul.f32 0.6931472, %v1175_v23  ;;  %v507_v57 = vpop.xlane.xlu0 %506 }
 0x197   : > { %v543_v60 = vsub.f32 %v401_v30, %v497_v24  ;;  %v406_v8 = vadd.f32 %v387_v44, %v1814_v15 }
 0x198   : > { %v1177_v32 = vpop.eup %1176  ;;  %v405_v48 = vadd.f32 %v385_v28, %v1808_v42 }
 0x199   : > { %v566_v31 = vsel %vm552_vm4, %v543_v60, 0.0  ;;  %v389_v33 = vmul.f32 0.6931472, %v1177_v32  ;;  %v548_v41 = vsub.f32 %v406_v8, %v507_v57 }
 0x19a   : > { %v567_v17 = vadd.f32 %v566_v31, %v565_v25  ;;  %v501_v38 = vpop.xlane.xlu1 %500  ;;  %v511_v18 = vpop.xlane.xlu0 %510 }
 0x19b   : > { %v545_v63 = vsub.f32 %v403_v51, %v501_v38  ;;  %v407_v58 = vadd.f32 %v389_v33, %v1820_v12  ;;  %v576_v42 = vsel %vm552_vm4, %v548_v41, 0.0 }
 0x19c   : > { %v1179_v59 = vpop.eup %1178  ;;  %v569_v54 = vadd.f32 %v568_v45, %v567_v17 }
 0x19d   : > { %v391_v37 = vmul.f32 0.6931472, %v1179_v59  ;;  %v570_v34 = vsel %vm552_vm4, %v545_v63, 0.0 }
 0x19e   : > { %v571_v3 = vadd.f32 %v570_v34, %v569_v54  ;;  %v505_v0 = vpop.xlane.xlu1 %504 }
 0x19f   : > { %v547_v5 = vsub.f32 %v405_v48, %v505_v0  ;;  %v408_v55 = vadd.f32 %v391_v37, %v1826_v22 }
 0x1a0   : > { %v1181_v7 = vpop.eup %1180  ;;  %v573_v15 = vadd.f32 %v572_v4, %v571_v3 }
 0x1a1   : > { %v393_v26 = vmul.f32 0.6931472, %v1181_v7  ;;  %v574_v61 = vsel %vm552_vm4, %v547_v5, 0.0  ;;  %v550_v20 = vsub.f32 %v408_v55, %v511_v18 }
 0x1a2   : > { %v575_v47 = vadd.f32 %v574_v61, %v573_v15  ;;  %v509_v11 = vpop.xlane.xlu1 %508 }
 0x1a3   : > { %v549_v29 = vsub.f32 %v407_v58, %v509_v11  ;;  %v409_v52 = vadd.f32 %v393_v26, %v1832_v43  ;;  %v580_v49 = vsel %vm552_vm4, %v550_v20, 0.0 }
 0x1a4   : > { %v577_v9 = vadd.f32 %v576_v42, %v575_v47 }
 0x1a5   : > { %v578_v36 = vsel %vm552_vm4, %v549_v29, 0.0 }
 0x1a6   : > { %v579_v22 = vadd.f32 %v578_v36, %v577_v9  ;;  %v513_v46 = vpop.xlane.xlu1 %512 }
 0x1a7   : > { %v551_v16 = vsub.f32 %v409_v52, %v513_v46 }
 0x1a8   : > { %v581_v40 = vadd.f32 %v580_v49, %v579_v22 }
 0x1a9   : > { %v582_v53 = vsel %vm552_vm4, %v551_v16, 0.0 }
 0x1aa   : > { %v583_v12 = vadd.f32 %v582_v53, %v581_v40 }
 0x1ac   : > { %584 = vadd.xlane.f32.xlu0 %v583_v12 }
 0x235   : > { %v585_v10 = vpop.xlane.xlu0 %584 }
 0x236   : > { %v586_v21 = vrot.slane %v585_v10, 4 }
 0x238   : > { %v587_v13 = vadd.f32 %v586_v21, %v585_v10 }
 0x23a   : > { %v588_v14 = vrot.slane %v587_v13, 2 }
 0x23c   : > { %v589_v1 = vadd.f32 %v588_v14, %v587_v13 }
 0x23e   : > { %v590_v30 = vrot.slane %v589_v1, 1 }
 0x240   : > { %v591_v50 = vadd.f32 %v590_v30, %v589_v1 }
 0x242   : > { %963 = vpush %v591_v50 }
 0x273   : > { %s964_s23 = spop %963  ;;  %845 = sbr.rel (%p956_p8) target bundleno = 914 (0x392), region = 36 }
 0x274   : > { %v593_v43 = vstv %s964_s23 }
 0x275   : > { %v594_v39 = vadd.f32 %v593_v43, %v535_v56 }
 0x277   : > { %596 = vst.msk [vmem:[#allocation5] sm:$0x1] %vm595_vm5, %v594_v39 }
 0x278   : > { %v846_v19 = vld [vmem:[#allocation3] sm:$0x3]  ;;  %v849_v24 = vld [vmem:[#allocation2] sm:$0x3]  ;;  %v851_v62 = vld [vmem:[#allocation4] sm:$0x3] }
 0x279   : > { %1182 = vlog2.f32 %v846_v19  ;;  %vm864_vm6 = vcmask 1040384   ;;  %v1952_v6 = vsub.s32 0, %v1521_v35  ;;  %v1953_v27 = vsub.s32 1, %v1521_v35 }
 0x27e   : > { %v878_v54 = vld [vmem:[#allocation5] sm:$0x1] }
 0x286   : > { %v1183_v23 = vpop.eup %1182 }
 0x287   : > { %v848_v44 = vmul.f32 0.6931472, %v1183_v23 }
 0x289   : > { %v850_v60 = vadd.f32 %v849_v24, %v848_v44 }
 0x28b   : > { %v852_v25 = vsub.f32 %v850_v60, %v851_v62 }
 0x28d   : > { %v857_v28 = vrot.slane %v852_v25, %v1952_v6  ;;  %v861_v31 = vrot.slane %v852_v25, %v1953_v27 }
 0x28f   : > { %v865_v51 = vsel %vm864_vm6, %v857_v28, 0.0  ;;  %v866_v32 = vsel %vm864_vm6, %v861_v31, 0.0 }
 0x290   : > { %v867_v17 = vadd.f32 %v866_v32, %v865_v51 }
 0x292   : > { %868 = vadd.xlane.f32.xlu0 %v867_v17 }
 0x31b   : > { %v869_v38 = vpop.xlane.xlu0 %868 }
 0x31c   : > { %v870_v45 = vrot.slane %v869_v38, 4 }
 0x31e   : > { %v871_v2 = vadd.f32 %v870_v45, %v869_v38 }
 0x320   : > { %v872_v8 = vrot.slane %v871_v2, 2 }
 0x322   : > { %v873_v63 = vadd.f32 %v872_v8, %v871_v2 }
 0x324   : > { %v874_v59 = vrot.slane %v873_v63, 1 }
 0x326   : > { %v875_v57 = vadd.f32 %v874_v59, %v873_v63 }
 0x328   : > { %965 = vpush %v875_v57 }
 0x359   : > { %s966_s24 = spop %965 }
 0x35a   : > { %v877_v33 = vstv %s966_s24 }
 0x35b   : > { %v879_v37 = vadd.f32 %v878_v54, %v877_v33 }
 0x35d   : > { %v881_v34 = vmul.f32 0.001953125, %v879_v37 }
 0x35f   : > { %967 = vpush %v881_v34 }
 0x390   : > { %s968_s25 = spop %967 }
 0x391   : > { %884 = sst [smem:[#allocation9]] %s968_s25 }
 0x392 PF: > { %p980_p1 = scmp.eq.s32.totalorder %s1298_s10, 1  ;;  %s1268_s26 = smov [#allocation9]  }
 0x394   : > { %972 = dma.smem_to_hbm (%p980_p1), %s1268_s26, 16, %s1905_s1, [#allocation8]  }
 0x395   : > { %1243 = dma.done.wait (%p980_p1), [#allocation8], 16  }
 0x396   : > { %1245 = vsyncadd (%p980_p1), [#allocation8], 4294967280 }
 0x397   : > { %898 = sfence }
 0x398 PF: > { %p12_p2 = scmp.ge.s32.totalorder %s1301_s11, 4   ;;  %s1954_s6 = smov %s1252_s7 }
 0x399   : > { %s1955_s7 = smov %s1256_s8  ;;  %s1956_s8 = smov %s1311_s14 }
 0x39a   : > { %s1957_s9 = smov %s1301_s11  ;;  %14 = sbr.rel (!%p12_p2) target bundleno = 4 (0x4), region = 72 }
 0x39f   :  { %904 = vsyncpa [#allocation7], 1 }
 0x3a0   :  { %906 = vsyncpa [#allocation7 + $0x1], 1 }
 0x3a1   :  { %907 = vsyncpa [#allocation8], 1 }
 0x3a2   :  { %909 = vsyncpa [#allocation8 + $0x1], 1 }

</bundles_post_ra>
